<compile_context>
chip_gen: v7x
topology: tpu7x:2x2x1
jax: 0.10.0
libtpu: 0.0.40
codegen_flags: <defaults>
</compile_context>

<pallas_src>
import functools

import jax
import jax.numpy as jnp
from jax import lax
from jax.experimental import pallas as pl
from jax.experimental.pallas import tpu as pltpu

_EPS = 1e-8           # eps of F.cosine_similarity / CosineEmbeddingLoss
_EPS2 = _EPS * _EPS   # clamp applied to squared norms (per factor)


def _vmem_capacity_bytes():
    """Physical per-TensorCore VMEM; falls back to the smallest across gens."""
    try:
        return int(pltpu.get_tpu_info().vmem_capacity_bytes)
    except Exception:
        return 64 * 1024 * 1024   # v7x per-TC floor; safe on v5e/v6e too


def _cosine_proto_loss_kernel(a_ref, b_ref, out_ref, acc_ref, *,
                              tm, n_valid, steps_per_shard, needs_mask):
    """Grid = (row_shards, tiles_per_shard).

    a_ref, b_ref : (tm, D) row tile of prototype_old / prototype_new.
    out_ref      : (1, 1, 1) f32 per-shard partial sum (written once per shard).
    acc_ref      : (tm, 1) f32 VMEM scratch holding per-row running partials.
    """
    p = pl.program_id(0)   # row shard (parallel -> megacore split on v7x)
    i = pl.program_id(1)   # tile within shard (reduction -> arbitrary)

    @pl.when(i == 0)
    def _init():
        acc_ref[...] = jnp.zeros_like(acc_ref)

    a = a_ref[...].astype(jnp.float32)                       # (tm, D)
    b = b_ref[...].astype(jnp.float32)                       # (tm, D)

    dot = jnp.sum(a * b, axis=-1, keepdims=True)             # (tm, 1)
    sa = jnp.sum(a * a, axis=-1, keepdims=True)               # (tm, 1)
    sb = jnp.sum(b * b, axis=-1, keepdims=True)               # (tm, 1)
    # cos = dot / (max(||a||, eps) * max(||b||, eps)).  Per-factor clamp + two
    # rsqrts (EUP slot, effectively free) — identical to the product clamp away
    # from eps, and never overflows f32 the way sa*sb can.
    cos = (dot
           * lax.rsqrt(jnp.maximum(sa, jnp.float32(_EPS2)))
           * lax.rsqrt(jnp.maximum(sb, jnp.float32(_EPS2))))
    per_row = 1.0 - cos                                       # (tm, 1)

    if needs_mask:
        # Rows >= n_valid are either past the arrays (partial / OOB-clamped
        # tiles) or trimmed by the min(#rows) rule: zero their contribution.
        base = (p * steps_per_shard + i) * tm
        row = lax.broadcasted_iota(jnp.int32, (tm, 1), 0) + base
        per_row = jnp.where(row < n_valid, per_row, 0.0)

    # Per-row partials only; the single full reduce happens in the finalize.
    acc_ref[...] += per_row

    @pl.when(i == pl.num_programs(1) - 1)
    def _finalize():
        out_ref[0] = jnp.sum(acc_ref[...], keepdims=True)     # (1, 1)


def cosine_prototype_loss(prototype_old, prototype_new, *,
                          max_rows_per_tile=None,
                          num_row_shards=2):
    """JAX/Pallas equivalent of CosinePrototypeLoss.forward.

    Args:
      prototype_old: (num_old_prototypes, embedding_size)
      prototype_new: (num_new_prototypes, embedding_size)
      max_rows_per_tile: optional cap on the row tile (testing / tuning).
      num_row_shards: leading 'parallel' grid axis size (2 lets v7x's two
        TensorCores stream disjoint row halves; neutral on v5e/v6e).
    Returns:
      scalar f32 loss.
    """
    n = int(min(prototype_old.shape[0], prototype_new.shape[0]))
    d = int(prototype_old.shape[1])
    assert int(prototype_new.shape[1]) == d, "embedding sizes must match"
    assert n > 0, "need at least one prototype row"

    itemsize = max(jnp.dtype(prototype_old.dtype).itemsize,
                   jnp.dtype(prototype_new.dtype).itemsize)

    # ---- generation-aware row-tile sizing ---------------------------------
    vmem_cap = _vmem_capacity_bytes()
    work_budget = vmem_cap // 2   # total working set: DMA bufs + temps + acc
    # Per tile row: 2 inputs x 2 pipeline buffers (native dtype)
    #             + ~3 live (tm, D) f32 compute temps (upcasts + product)
    #             + lane-padded (tm, 1) accumulator & per_row (~1 KiB/row).
    per_row_bytes = d * (4 * itemsize + 12) + 1024
    tm = work_budget // per_row_bytes
    tm = max(8, (tm // 8) * 8)
    # Cap each input block at ~8 MiB: past the measured per-step-overhead knee,
    # and keeps the 4 double-buffered blocks within v7x's smaller VMEM.
    blk_cap = max(8, ((8 * 1024 * 1024) // (d * itemsize)) // 8 * 8)
    tm = min(tm, blk_cap)
    n8 = ((n + 7) // 8) * 8
    tm = min(tm, n8)
    if max_rows_per_tile is not None:
        tm = min(tm, max(8, (max_rows_per_tile // 8) * 8))

    total_blocks = int(pl.cdiv(n, tm))
    num_shards = max(1, min(int(num_row_shards), total_blocks))
    steps_per_shard = int(pl.cdiv(total_blocks, num_shards))
    needs_mask = (num_shards * steps_per_shard * tm) != n

    # vmem limit = actual working set + margin, clamped to physical VMEM.
    dma_bytes = 4 * tm * d * itemsize          # 2 inputs x 2 pipeline buffers
    temp_bytes = 3 * tm * d * 4                # f32 compute temporaries
    acc_bytes = 2 * tm * 128 * 4               # (tm,1) acc + per_row, lane-padded
    vmem_limit = dma_bytes + temp_bytes + acc_bytes + (8 << 20)
    vmem_limit = int(min(max(vmem_limit, 32 << 20), vmem_cap))

    def in_map(p, i):
        # Clamp so an overhanging shard tile never DMAs a fully out-of-bounds
        # block; the in-kernel row mask zeroes its contribution.
        return (jnp.minimum(p * steps_per_shard + i, total_blocks - 1), 0)

    kernel = functools.partial(
        _cosine_proto_loss_kernel, tm=tm, n_valid=n,
        steps_per_shard=steps_per_shard, needs_mask=needs_mask)

    cost = pl.CostEstimate(
        flops=6 * n * d,
        transcendentals=2 * n,
        bytes_accessed=n * d * (jnp.dtype(prototype_old.dtype).itemsize
                                + jnp.dtype(prototype_new.dtype).itemsize)
        + 4 * num_shards)

    partial_sums = pl.pallas_call(
        kernel,
        out_shape=jax.ShapeDtypeStruct((num_shards, 1, 1), jnp.float32),
        grid_spec=pltpu.PrefetchScalarGridSpec(
            num_scalar_prefetch=0,
            grid=(num_shards, steps_per_shard),
            in_specs=[
                pl.BlockSpec((tm, d), in_map),
                pl.BlockSpec((tm, d), in_map),
            ],
            out_specs=pl.BlockSpec((1, 1, 1), lambda p, i: (p, 0, 0)),
            scratch_shapes=[pltpu.VMEM((tm, 1), jnp.float32)],
        ),
        compiler_params=pltpu.CompilerParams(
            dimension_semantics=("parallel", "arbitrary"),
            vmem_limit_bytes=vmem_limit,
        ),
        cost_estimate=cost,
    )(prototype_old, prototype_new)

    # Combine per-shard partials and form the mean (tiny XLA epilogue).
    return jnp.sum(partial_sums) / jnp.float32(n)


def _reference_loss(a, b):
    n = min(a.shape[0], b.shape[0])
    a = a[:n].astype(jnp.float32)
    b = b[:n].astype(jnp.float32)
    dot = jnp.sum(a * b, axis=-1)
    denom = jnp.maximum(
        jnp.linalg.norm(a, axis=-1) * jnp.linalg.norm(b, axis=-1), _EPS)
    return jnp.mean(1.0 - dot / denom)


if __name__ == "__main__":
    key = jax.random.PRNGKey(0)
    k0, k1, k2, k3, k4, k5 = jax.random.split(key, 6)

    # Test 1: mismatched row counts (trimmed to 10), small embedding; single
    # partial tile, single shard.
    num_old, num_new, emb = 12, 10, 32
    prototype_old = jax.random.normal(k0, (num_old, emb), dtype=jnp.float32)
    prototype_new = jax.random.normal(k1, (num_new, emb), dtype=jnp.float32)
    loss = jax.block_until_ready(
        cosine_prototype_loss(prototype_old, prototype_new))
    ref = _reference_loss(prototype_old, prototype_new)
    assert jnp.allclose(loss, ref, atol=1e-5, rtol=1e-5), (loss, ref)

    # Test 2: multi-step grid with 2 row shards, a partial tile and an
    # OOB-clamped shard tile (40 rows, 16-row tiles -> 3 blocks over 2 shards).
    a2 = jax.random.normal(k2, (40, 128), dtype=jnp.float32)
    b2 = jax.random.normal(k3, (40, 128), dtype=jnp.float32)
    loss2 = jax.block_until_ready(
        cosine_prototype_loss(a2, b2, max_rows_per_tile=16))
    ref2 = _reference_loss(a2, b2)
    assert jnp.allclose(loss2, ref2, atol=1e-5, rtol=1e-5), (loss2, ref2)

    # Test 3: bf16 inputs stay bf16 in HBM, f32 math inside the kernel.
    a3 = jax.random.normal(k4, (24, 64), dtype=jnp.bfloat16)
    b3 = jax.random.normal(k5, (20, 64), dtype=jnp.bfloat16)
    loss3 = jax.block_until_ready(cosine_prototype_loss(a3, b3))
    ref3 = _reference_loss(a3, b3)
    assert jnp.allclose(loss3, ref3, atol=1e-3, rtol=1e-3), (loss3, ref3)

    print("KERNEL_OK")
</pallas_src>

<mosaic_0001>
module attributes {stable_mosaic.version = 11 : i64} {
  func.func @_cosine_proto_loss_kernel(%arg0: i32, %arg1: i32, %arg2: memref<16x32xf32, #tpu.memory_space<vmem>>, %arg3: memref<16x32xf32, #tpu.memory_space<vmem>>, %arg4: memref<1x1x1xf32, #tpu.memory_space<vmem>>, %arg5: memref<16x1xf32, #tpu.memory_space<vmem>>) attributes {dimension_semantics = [#tpu.dimension_semantics<parallel>, #tpu.dimension_semantics<arbitrary>], iteration_bounds = array<i64: 1, 1>, scalar_prefetch = 0 : i64, scratch_operands = 1 : i64, tpu.core_type = #tpu.core_type<tc>, window_params = [{transform_indices = @transform_0, window_bounds = array<i64: 16, 32>}, {transform_indices = @transform_1, window_bounds = array<i64: 16, 32>}, {transform_indices = @transform_2, window_bounds = array<i64: 1, 1, 1>}]} {
    %c0_i32 = arith.constant 0 : i32
    %0 = arith.cmpi eq, %arg1, %c0_i32 : i32
    %1 = arith.extui %0 : i1 to i32
    %c0_i32_0 = arith.constant 0 : i32
    %2 = arith.cmpi ne, %1, %c0_i32_0 : i32
    scf.if %2 {
      %cst_16 = arith.constant 0.000000e+00 : f32
      %40 = vector.broadcast %cst_16 : f32 to vector<16x1xf32>
      %c0_17 = arith.constant 0 : index
      %c0_18 = arith.constant 0 : index
      %41 = vector.load %arg5[%c0_17, %c0_18] : memref<16x1xf32, #tpu.memory_space<vmem>>, vector<16x1xf32>
      tpu.vector_store %arg5[%c0_17, %c0_18], %40 {strides = array<i32>} : memref<16x1xf32, #tpu.memory_space<vmem>>, vector<16x1xf32>,
    } else {
    }
    %c0 = arith.constant 0 : index
    %c0_1 = arith.constant 0 : index
    %3 = vector.load %arg2[%c0, %c0_1] : memref<16x32xf32, #tpu.memory_space<vmem>>, vector<16x32xf32>
    %c0_2 = arith.constant 0 : index
    %c0_3 = arith.constant 0 : index
    %4 = vector.load %arg3[%c0_2, %c0_3] : memref<16x32xf32, #tpu.memory_space<vmem>>, vector<16x32xf32>
    %5 = arith.mulf %3, %4 : vector<16x32xf32>
    %cst = arith.constant dense<0.000000e+00> : vector<16xf32>
    %6 = vector.multi_reduction <add>, %5, %cst [1] : vector<16x32xf32> to vector<16xf32>
    %7 = vector.shape_cast %6 : vector<16xf32> to vector<16x1xf32>
    %8 = arith.mulf %3, %3 : vector<16x32xf32>
    %cst_4 = arith.constant dense<0.000000e+00> : vector<16xf32>
    %9 = vector.multi_reduction <add>, %8, %cst_4 [1] : vector<16x32xf32> to vector<16xf32>
    %10 = vector.shape_cast %9 : vector<16xf32> to vector<16x1xf32>
    %11 = arith.mulf %4, %4 : vector<16x32xf32>
    %cst_5 = arith.constant dense<0.000000e+00> : vector<16xf32>
    %12 = vector.multi_reduction <add>, %11, %cst_5 [1] : vector<16x32xf32> to vector<16xf32>
    %13 = vector.shape_cast %12 : vector<16xf32> to vector<16x1xf32>
    %cst_6 = arith.constant 1.000000e-16 : f32
    %14 = vector.broadcast %cst_6 : f32 to vector<16x1xf32>
    %15 = arith.maximumf %10, %14 : vector<16x1xf32>
    %16 = math.rsqrt %15 : vector<16x1xf32>
    %17 = arith.mulf %7, %16 : vector<16x1xf32>
    %cst_7 = arith.constant 1.000000e-16 : f32
    %18 = vector.broadcast %cst_7 : f32 to vector<16x1xf32>
    %19 = arith.maximumf %13, %18 : vector<16x1xf32>
    %20 = math.rsqrt %19 : vector<16x1xf32>
    %21 = arith.mulf %17, %20 : vector<16x1xf32>
    %cst_8 = arith.constant 1.000000e+00 : f32
    %22 = vector.broadcast %cst_8 : f32 to vector<16x1xf32>
    %23 = arith.subf %22, %21 : vector<16x1xf32>
    %c1_i32 = arith.constant 1 : i32
    %24 = arith.muli %arg0, %c1_i32 : i32
    %25 = arith.addi %24, %arg1 : i32
    %c16_i32 = arith.constant 16 : i32
    %26 = arith.muli %25, %c16_i32 : i32
    %27 = tpu.iota {dimensions = array<i32: 0>} : vector<16x1xi32>
    %28 = vector.broadcast %26 : i32 to vector<16x1xi32>
    %29 = arith.addi %27, %28 : vector<16x1xi32>
    %c10_i32 = arith.constant 10 : i32
    %30 = vector.broadcast %c10_i32 : i32 to vector<16x1xi32>
    %31 = arith.cmpi slt, %29, %30 : vector<16x1xi32>
    %cst_9 = arith.constant 0.000000e+00 : f32
    %32 = vector.broadcast %cst_9 : f32 to vector<16x1xf32>
    %33 = arith.select %31, %23, %32 : vector<16x1xi1>, vector<16x1xf32>
    %c0_10 = arith.constant 0 : index
    %c0_11 = arith.constant 0 : index
    %34 = vector.load %arg5[%c0_10, %c0_11] : memref<16x1xf32, #tpu.memory_space<vmem>>, vector<16x1xf32>
    %35 = arith.addf %34, %33 : vector<16x1xf32>
    %c0_12 = arith.constant 0 : index
    %c0_13 = arith.constant 0 : index
    %36 = vector.load %arg5[%c0_12, %c0_13] : memref<16x1xf32, #tpu.memory_space<vmem>>, vector<16x1xf32>
    tpu.vector_store %arg5[%c0_12, %c0_13], %35 {strides = array<i32>} : memref<16x1xf32, #tpu.memory_space<vmem>>, vector<16x1xf32>,
    %c0_i32_14 = arith.constant 0 : i32
    %37 = arith.cmpi eq, %arg1, %c0_i32_14 : i32
    %38 = arith.extui %37 : i1 to i32
    %c0_i32_15 = arith.constant 0 : i32
    %39 = arith.cmpi ne, %38, %c0_i32_15 : i32
    scf.if %39 {
      %c0_16 = arith.constant 0 : index
      %c0_17 = arith.constant 0 : index
      %40 = vector.load %arg5[%c0_16, %c0_17] : memref<16x1xf32, #tpu.memory_space<vmem>>, vector<16x1xf32>
      %41 = vector.shape_cast %40 : vector<16x1xf32> to vector<1x16x1xf32>
      %cst_18 = arith.constant dense<0.000000e+00> : vector<1xf32>
      %42 = vector.multi_reduction <add>, %41, %cst_18 [1, 2] : vector<1x16x1xf32> to vector<1xf32>
      %43 = vector.shape_cast %42 : vector<1xf32> to vector<1x1x1xf32>
      %44 = vector.extract %43[0, 0, 0] : f32 from vector<1x1x1xf32>
      %45 = vector.broadcast %44 : f32 to vector<1x1xf32>
      %c0_19 = arith.constant 0 : index
      %c0_20 = arith.constant 0 : index
      %c0_21 = arith.constant 0 : index
      %46 = vector.load %arg4[%c0_19, %c0_20, %c0_21] : memref<1x1x1xf32, #tpu.memory_space<vmem>>, vector<1x1x1xf32>
      %47 = vector.shape_cast %46 : vector<1x1x1xf32> to vector<1x1xf32>
      %48 = vector.shape_cast %45 : vector<1x1xf32> to vector<1x1x1xf32>
      tpu.vector_store %arg4[%c0_19, %c0_20, %c0_21], %48 {strides = array<i32>} : memref<1x1x1xf32, #tpu.memory_space<vmem>>, vector<1x1x1xf32>,
    } else {
    }
    return
  }
  func.func @transform_0(%arg0: i32, %arg1: i32) -> (i32, i32) {
    %c1_i32 = arith.constant 1 : i32
    %0 = arith.muli %arg0, %c1_i32 : i32
    %1 = arith.addi %0, %arg1 : i32
    %c0_i32 = arith.constant 0 : i32
    %2 = arith.minsi %1, %c0_i32 : i32
    %c0_i32_0 = arith.constant 0 : i32
    %c0_i32_1 = arith.constant 0 : i32
    return %2, %c0_i32_0 : i32, i32
  }
  func.func @transform_1(%arg0: i32, %arg1: i32) -> (i32, i32) {
    %c1_i32 = arith.constant 1 : i32
    %0 = arith.muli %arg0, %c1_i32 : i32
    %1 = arith.addi %0, %arg1 : i32
    %c0_i32 = arith.constant 0 : i32
    %2 = arith.minsi %1, %c0_i32 : i32
    %c0_i32_0 = arith.constant 0 : i32
    %c0_i32_1 = arith.constant 0 : i32
    return %2, %c0_i32_0 : i32, i32
  }
  func.func @transform_2(%arg0: i32, %arg1: i32) -> (i32, i32, i32) {
    %c0_i32 = arith.constant 0 : i32
    %c0_i32_0 = arith.constant 0 : i32
    %c0_i32_1 = arith.constant 0 : i32
    return %arg0, %c0_i32, %c0_i32_0 : i32, i32, i32
  }
}

</mosaic_0001>

<bundles_post_ra>
// kernel: tpu_custom_call.1
= control target key start
LH: loop header
LB: loop body
LE: loop exit
PB: predicated region body
PF: predicated region fallthrough
CT: control target
= control target key end

     0   :  { %7 = vsyncpa [#allocation4], 0  ;;  %s326_s0 = inlined_call_operand.hbm [shape: f32[12,32], index: 0, kind: input, shape index: {}]   ;;  %s327_s1 = inlined_call_operand.hbm [shape: f32[10,32], index: 1, kind: input, shape index: {}]   ;;  %s328_s2 = inlined_call_operand.hbm [shape: f32[1,1,1], index: 2, kind: output, shape index: {}]  }
   0x1   :  { %8 = vsyncpa [#allocation7], 0 }
   0x2   :  { %9 = vsyncpa [#allocation5], 0  ;;  %s257_s9 = smov [#allocation3]   ;;  %s185_s13 = scalar_lea.hbm %s326_s0, 256 }
   0x3   :  { %s21_s10 = sshll.u32 %s257_s9, 4  ;;  %p186_p0 = scmp.ne.s32.totalorder %s326_s0, %s185_s13  ;;  %s22_s10 = int_to_ptr.vmem [resolvable:$true] %s21_s10 }
   0x4   :  { %p189_p1 = scmp.lt.u32.totalorder %s185_s13, %s326_s0 }
   0x6   :  { %p191_p2 = pnand %p189_p1, %p186_p0 }
   0x8   :  { %194 = shalt.err (!%p191_p2)
}
   0x9   :  { %s195_s18 = scalar_lea.vmem %s22_s10, 256  ;;  %p200_p4 = scmp.lt.s32.totalorder %s22_s10, %s22_s10 }
   0xa   :  { %p196_p3 = scmp.ne.s32.totalorder %s22_s10, %s195_s18  ;;  %p201_p5 = scmp.lt.s32.totalorder %s195_s18, %s195_s18 }
   0xc   :  { %p202_p6 = por %p201_p5, %p200_p4 }
   0xe   :  { %p203_p7 = pnand %p202_p6, %p196_p3 }
  0x10   :  { %206 = shalt.err (!%p203_p7)
}
  0x11   :  { %s258_s19 = smov 128   ;;  %s259_s20 = smov 8  }
  0x12   :  { %27 = dma.hbm_to_vmem [thread:$0]  %s326_s0, 256, %s22_s10, [#allocation4], %s258_s19, %s258_s19, %s259_s20  }
  0x13   :  { %s260_s23 = smov [#allocation6]   ;;  %s207_s27 = scalar_lea.hbm %s327_s1, 256 }
  0x14   :  { %s39_s24 = sshll.u32 %s260_s23, 4  ;;  %p208_p8 = scmp.ne.s32.totalorder %s327_s1, %s207_s27  ;;  %s40_s24 = int_to_ptr.vmem [resolvable:$true] %s39_s24 }
  0x15   :  { %p211_p9 = scmp.lt.u32.totalorder %s207_s27, %s327_s1 }
  0x17   :  { %p213_p10 = pnand %p211_p9, %p208_p8 }
  0x19   :  { %216 = shalt.err (!%p213_p10)
}
  0x1a   :  { %s217_s4 = scalar_lea.vmem %s40_s24, 256  ;;  %p222_p12 = scmp.lt.s32.totalorder %s40_s24, %s40_s24 }
  0x1b   :  { %p218_p11 = scmp.ne.s32.totalorder %s40_s24, %s217_s4  ;;  %p223_p13 = scmp.lt.s32.totalorder %s217_s4, %s217_s4 }
  0x1d   :  { %p224_p0 = por %p223_p13, %p222_p12 }
  0x1f   :  { %p225_p1 = pnand %p224_p0, %p218_p11 }
  0x21   :  { %228 = shalt.err (!%p225_p1)
}
  0x22   :  { %45 = dma.hbm_to_vmem [thread:$0]  %s327_s1, 256, %s40_s24, [#allocation7], %s258_s19, %s258_s19, %s259_s20  }
  0x23   :  { %251 = dma.done.wait [#allocation4], 256  }
  0x24   :  { %252 = vsyncadd [#allocation4], 4294967040 }
  0x25   :  { %253 = dma.done.wait [#allocation7], 256  }
  0x26   :  { %254 = vsyncadd [#allocation7], 4294967040  ;;  %v68_v0 = vld [vmem:[#allocation3 + $0x8] sm:$0xff]  ;;  %vm73_vm0 = vcmask 261120   ;;  %v70_v1 = vld [vmem:[#allocation6 + $0x8] sm:$0xff]  ;;  %vm64_vm1 = vcmask 7168   ;;  %v112_v25 = vlaneseq }
  0x27   :  { %v67_v2 = vld [vmem:[#allocation3] sm:$0xff]  ;;  %v81_v3 = vmul.f32 %v68_v0, %v68_v0  ;;  %v89_v4 = vmul.f32 %v70_v1, %v70_v1  ;;  %v69_v6 = vld [vmem:[#allocation6] sm:$0xff]  ;;  %v72_v12 = vmul.f32 %v70_v1, %v68_v0  ;;  %v261_v16 = vmov 0.0   ;;  %s262_s1 = smov [#allocation8]  }
  0x28   :  { %v80_v5 = vmul.f32 %v67_v2, %v67_v2  ;;  %v88_v7 = vmul.f32 %v69_v6, %v69_v6  ;;  %v71_v13 = vmul.f32 %v69_v6, %v67_v2  ;;  %66 = vst.msk [vmem:[#allocation2 + $0x8] sm:$0xff] %vm64_vm1, %v261_v16  ;;  %65 = vst.msk [vmem:[#allocation2] sm:$0xff] %vm64_vm1, %v261_v16  ;;  %v113_v26 = vshrl.u32 %v112_v25, 7  ;;  %s155_s6 = sshll.u32 %s262_s1, 4  ;;  %s156_s6 = int_to_ptr.vmem [resolvable:$true] %s155_s6 }
  0x29   :  { %v85_v8 = vsel %vm73_vm0, %v81_v3, 0.0  ;;  %v93_v9 = vsel %vm73_vm0, %v89_v4, 0.0  ;;  %v77_v14 = vsel %vm73_vm0, %v72_v12, 0.0  ;;  %vm147_vm3 = vcmask 0   ;;  %s229_s8 = scalar_lea.vmem %s156_s6, 16  ;;  %s233_s9 = scalar_lea.vmem %s156_s6, 32 }
  0x2a   :  { %86 = vadd.xlane.f32.xlu0 %v85_v8  ;;  %94 = vadd.xlane.f32.xlu1 %v93_v9  ;;  %v82_v10 = vsel %vm73_vm0, %v80_v5, 0.0  ;;  %v90_v11 = vsel %vm73_vm0, %v88_v7, 0.0  ;;  %v74_v15 = vsel %vm73_vm0, %v71_v13, 0.0  ;;  %v114_v29 = vadd.s32 8, %v113_v26  ;;  %p230_p2 = scmp.ne.s32.totalorder %s156_s6, %s229_s8  ;;  %p234_p3 = scmp.lt.s32.totalorder %s156_s6, %s156_s6 }
  0x2b   :  { %p235_p4 = scmp.lt.s32.totalorder %s233_s9, %s229_s8 }
  0x2c   :  { %vm119_vm2 = vcmp.lt.s32.totalorder %v114_v29, 10 }
  0x2d   :  { %p236_p5 = por %p235_p4, %p234_p3 }
  0x2e   :  { %83 = vadd.xlane.f32.xlu0 %v82_v10  ;;  %91 = vadd.xlane.f32.xlu1 %v90_v11 }
  0x2f   :  { %v123_v37 = vld [vmem:[#allocation2 + $0x8] sm:$0xff]  ;;  %v122_v42 = vld [vmem:[#allocation2] sm:$0xff]  ;;  %p237_p6 = pnand %p236_p5, %p230_p2 }
  0x32   :  { %78 = vadd.xlane.f32.xlu0 %v77_v14  ;;  %75 = vadd.xlane.f32.xlu1 %v74_v15 }
  0xb7   :  { %v87_v17 = vpop.xlane.xlu0 %86  ;;  %v95_v18 = vpop.xlane.xlu1 %94 }
  0xb8   :  { %v97_v19 = vmax.f32 %v87_v17, 1e-16  ;;  %v103_v20 = vmax.f32 %v95_v18, 1e-16 }
  0xba   :  { %177 = vrsqrt.f32 %v97_v19 }
  0xbb   :  { %179 = vrsqrt.f32 %v103_v20  ;;  %v84_v21 = vpop.xlane.xlu0 %83  ;;  %v92_v22 = vpop.xlane.xlu1 %91 }
  0xbc   :  { %v96_v23 = vmax.f32 %v84_v21, 1e-16  ;;  %v102_v24 = vmax.f32 %v92_v22, 1e-16 }
  0xbe   :  { %181 = vrsqrt.f32 %v96_v23 }
  0xbf   :  { %183 = vrsqrt.f32 %v102_v24  ;;  %v79_v27 = vpop.xlane.xlu0 %78  ;;  %v76_v32 = vpop.xlane.xlu1 %75 }
  0xc4   :  { %v178_v28 = vpop.eup %177 }
  0xc5   :  { %v180_v30 = vpop.eup %179  ;;  %v101_v31 = vmul.f32 %v178_v28, %v79_v27 }
  0xc7   :  { %v107_v33 = vmul.f32 %v180_v30, %v101_v31 }
  0xc8   :  { %v182_v34 = vpop.eup %181 }
  0xc9   :  { %v184_v35 = vpop.eup %183  ;;  %v109_v36 = vsub.f32 1.0, %v107_v33  ;;  %v100_v38 = vmul.f32 %v182_v34, %v76_v32 }
  0xcb   :  { %v121_v39 = vsel %vm119_vm2, %v109_v36, 0.0  ;;  %v106_v40 = vmul.f32 %v184_v35, %v100_v38 }
  0xcc   :  { %v125_v41 = vadd.f32 %v123_v37, %v121_v39 }
  0xcd   :  { %v108_v43 = vsub.f32 1.0, %v106_v40 }
  0xce   :  { %128 = vst.msk [vmem:[#allocation2 + $0x8] sm:$0xff] %vm64_vm1, %v125_v41 }
  0xcf   :  { %v124_v44 = vadd.f32 %v122_v42, %v108_v43 }
  0xd1   :  { %127 = vst.msk [vmem:[#allocation2] sm:$0xff] %vm64_vm1, %v124_v44 }
  0xd5   :  { %v133_v45 = vld [vmem:[#allocation2 + $0x8] sm:$0xff] }
  0xd6   :  { %v135_v48 = vsel %vm64_vm1, %v133_v45, 0.0 }
  0xd8   :  { %v132_v46 = vld [vmem:[#allocation2] sm:$0xff] }
  0xd9   :  { %v134_v47 = vsel %vm64_vm1, %v132_v46, 0.0 }
  0xda   :  { %v136_v49 = vadd.f32 %v135_v48, %v134_v47 }
  0xdc   :  { %137 = vadd.xlane.f32.xlu0 %v136_v49 }
 0x169   :  { %v138_v50 = vpop.xlane.xlu0 %137 }
 0x16a   :  { %v139_v51 = vrot.slane %v138_v50, 4 }
 0x16c   :  { %v140_v52 = vadd.f32 %v139_v51, %v138_v50 }
 0x16e   :  { %v141_v53 = vrot.slane %v140_v52, 2 }
 0x170   :  { %v142_v54 = vadd.f32 %v141_v53, %v140_v52 }
 0x172   :  { %v143_v55 = vrot.slane %v142_v54, 1 }
 0x174   :  { %v144_v56 = vadd.f32 %v143_v55, %v142_v54 }
 0x176   :  { %169 = vpush %v144_v56 }
 0x1a7   :  { %s170_s7 = spop %169 }
 0x1a8   :  { %v146_v57 = vstv %s170_s7 }
 0x1a9   :  { %148 = vst.msk [vmem:[#allocation8] sm:$0x1] %vm147_vm3, %v146_v57 }
 0x1aa   :  { %240 = shalt.err (!%p237_p6)
}
 0x1ab   :  { %s241_s12 = scalar_lea.hbm %s328_s2, 16 }
 0x1ac   :  { %p242_p7 = scmp.ne.s32.totalorder %s328_s2, %s241_s12  ;;  %p245_p8 = scmp.lt.u32.totalorder %s241_s12, %s328_s2 }
 0x1ae   :  { %p247_p9 = pnand %p245_p8, %p242_p7 }
 0x1b0   :  { %250 = shalt.err (!%p247_p9)
}
 0x1b1   :  { %158 = dma.vmem_to_hbm [thread:$0]  %s156_s6, 16, %s328_s2, [#allocation5]  }
 0x1b2   :  { %255 = dma.done.wait [#allocation5], 16  }
 0x1b3   :  { %256 = vsyncadd [#allocation5], 4294967280 }
 0x1b4   :  { %162 = vsyncpa [#allocation4], 1 }
 0x1b5   :  { %163 = vsyncpa [#allocation7], 1 }
 0x1b6   :  { %164 = vsyncpa [#allocation5], 1 }

</bundles_post_ra>
